<compile_context>
chip_gen: v7x
topology: tpu7x:2x2x1
jax: 0.10.0
libtpu: 0.0.40
codegen_flags: <defaults>
</compile_context>

<pallas_src>
import functools

import jax
import jax.numpy as jnp
from jax.experimental import pallas as pl
from jax.experimental.pallas import tpu as pltpu

MAX_ORDER = 3
NUM_COEFFS = (MAX_ORDER + 1) ** 2  # 16

# Real spherical harmonic constants (graphics convention).
_C0 = 0.28209479177387814
_C1 = 0.4886025119029199
_C2 = (1.0925484305920792, -1.0925484305920792, 0.31539156525252005,
       -1.0925484305920792, 0.5462742152960396)
_C3 = (-0.5900435899266435, 2.890611442640554, -0.4570457994644658,
       0.3731763325901154, -0.4570457994644658, 1.445305721320277,
       -0.5900435899266435)

_TL = 1024  # lane tile -> 8 * _TL = 8192 points per grid step


def _sh_kernel(theta_ref, phi_ref, dc_ref, rest_ref, out_ref, *, num_active):
  """Blocks: theta/phi (8, TL); dc (3, 8, TL); rest (R, 8, TL); out (3, 8, TL).

  Points fill full (8, TL) vreg tiles. `rest` rows are k-major:
  row = (k - 1) * 3 + channel. Coefficients are accumulated row by row.
  """
  theta = theta_ref[...]
  phi = phi_ref[...]
  st = jnp.sin(theta)
  ct = jnp.cos(theta)
  sp = jnp.sin(phi)
  cp = jnp.cos(phi)
  x = st * cp
  y = st * sp
  z = ct

  # l = 0 : Y_0 is the constant C0.
  acc = [dc_ref[c] * _C0 for c in range(3)]

  def mac(k, basis_k):
    for c in range(3):
      acc[c] = acc[c] + rest_ref[(k - 1) * 3 + c] * basis_k

  if num_active > 1:      # l = 1
    mac(1, -_C1 * y)
    mac(2, _C1 * z)
    mac(3, -_C1 * x)
  if num_active > 4:      # l = 2
    xx, yy, zz = x * x, y * y, z * z
    xy, yz, xz = x * y, y * z, x * z
    mac(4, _C2[0] * xy)
    mac(5, _C2[1] * yz)
    mac(6, _C2[2] * (2.0 * zz - xx - yy))
    mac(7, _C2[3] * xz)
    mac(8, _C2[4] * (xx - yy))
  if num_active > 9:      # l = 3
    mac(9,  _C3[0] * y * (3.0 * xx - yy))
    mac(10, _C3[1] * xy * z)
    mac(11, _C3[2] * y * (4.0 * zz - xx - yy))
    mac(12, _C3[3] * z * (2.0 * zz - 3.0 * xx - 3.0 * yy))
    mac(13, _C3[4] * x * (4.0 * zz - xx - yy))
    mac(14, _C3[5] * z * (xx - yy))
    mac(15, _C3[6] * x * (xx - 3.0 * yy))

  for c in range(3):
    out_ref[c] = acc[c]


@functools.partial(jax.jit, static_argnames=("active_order",))
def spherical_harmonics_forward(directions, sh_coeffs_dc, sh_coeffs_rest,
                                active_order=MAX_ORDER):
  """directions: (N, 2) float32 (theta, phi); params as in the torch module.

  Returns radiance of shape (N, 3) float32.
  """
  n = directions.shape[0]
  num_active = (active_order + 1) ** 2

  # Fold the point axis over sublanes: n -> (8, L). Only the point count needs
  # rounding to a multiple of 8; the lane axis uses ragged last blocks, so the
  # heavy coefficient tensor is NOT padded to a tile multiple.
  n8 = 8 * ((n + 7) // 8)
  pad = n8 - n
  L = n8 // 8

  theta = directions[:, 0].astype(jnp.float32)
  phi = directions[:, 1].astype(jnp.float32)

  # dc: (N, 3, 1) -> (3, N); rest: (N, 3, 15) -> (15, 3, N) -> (45, N) with
  # k-major rows (row = (k-1)*3 + channel) so lower active orders read only a
  # prefix of rows. This is the single remaining wrapper relayout pass.
  # TODO(synk): storing the coefficients in (rows, N) layout upstream (or an
  # in-kernel XLU transpose of naturally laid-out blocks) would remove it.
  dc = jnp.transpose(sh_coeffs_dc.reshape(n, 3), (1, 0)).astype(jnp.float32)
  rest = jnp.transpose(sh_coeffs_rest, (2, 1, 0)).astype(jnp.float32)
  rest = rest.reshape(3 * (NUM_COEFFS - 1), n)

  if pad:
    theta = jnp.pad(theta, (0, pad))
    phi = jnp.pad(phi, (0, pad))
    dc = jnp.pad(dc, ((0, 0), (0, pad)))
    rest = jnp.pad(rest, ((0, 0), (0, pad)))

  theta = theta.reshape(8, L)
  phi = phi.reshape(8, L)
  dc = dc.reshape(3, 8, L)
  rest = rest.reshape(3 * (NUM_COEFFS - 1), 8, L)

  # Stream only the coefficient rows that are active. Row counts are divisors
  # of 45 so the leading block dim always divides the array.
  if num_active <= 1:
    rest_rows = 3                       # unused by the kernel; minimal read
  elif num_active <= 4:
    rest_rows = 9                       # order 1: 4x less coefficient traffic
  else:
    rest_rows = 3 * (NUM_COEFFS - 1)    # orders 2-3: all 45 rows

  tl = min(_TL, L)
  grid = (pl.cdiv(L, tl),)

  out = pl.pallas_call(
      functools.partial(_sh_kernel, num_active=num_active),
      out_shape=jax.ShapeDtypeStruct((3, 8, L), jnp.float32),
      grid=grid,
      in_specs=[
          pl.BlockSpec((8, tl), lambda i: (0, i)),
          pl.BlockSpec((8, tl), lambda i: (0, i)),
          pl.BlockSpec((3, 8, tl), lambda i: (0, 0, i)),
          pl.BlockSpec((rest_rows, 8, tl), lambda i: (0, 0, i)),
      ],
      out_specs=pl.BlockSpec((3, 8, tl), lambda i: (0, 0, i)),
      compiler_params=pltpu.CompilerParams(
          dimension_semantics=("parallel",)),
  )(theta, phi, dc, rest)

  out = out.reshape(3, n8)[:, :n]
  return jnp.transpose(out, (1, 0))  # (N, 3)


def _sh_basis(theta, phi):
  """theta, phi: (N,). Returns (N, 16) real SH basis values."""
  st = jnp.sin(theta)
  ct = jnp.cos(theta)
  sp = jnp.sin(phi)
  cp = jnp.cos(phi)
  x = st * cp
  y = st * sp
  z = ct
  xx, yy, zz = x * x, y * y, z * z
  xy, yz, xz = x * y, y * z, x * z
  cols = [
      _C0 * jnp.ones_like(x),
      -_C1 * y, _C1 * z, -_C1 * x,
      _C2[0] * xy, _C2[1] * yz, _C2[2] * (2.0 * zz - xx - yy),
      _C2[3] * xz, _C2[4] * (xx - yy),
      _C3[0] * y * (3.0 * xx - yy),
      _C3[1] * xy * z,
      _C3[2] * y * (4.0 * zz - xx - yy),
      _C3[3] * z * (2.0 * zz - 3.0 * xx - 3.0 * yy),
      _C3[4] * x * (4.0 * zz - xx - yy),
      _C3[5] * z * (xx - yy),
      _C3[6] * x * (xx - 3.0 * yy),
  ]
  return jnp.stack(cols, axis=-1)


def _reference_forward(directions, sh_coeffs_dc, sh_coeffs_rest,
                       active_order=MAX_ORDER):
  """Plain-JAX reference for correctness checking."""
  sh = jnp.concatenate([sh_coeffs_dc, sh_coeffs_rest], axis=-1)  # (N, 3, 16)
  num_active = (active_order + 1) ** 2
  sh = sh * (jnp.arange(NUM_COEFFS) < num_active).astype(sh.dtype)
  basis = _sh_basis(directions[:, 0], directions[:, 1])          # (N, 16)
  return jnp.einsum("nck,nk->nc", sh, basis)                     # (N, 3)


if __name__ == "__main__":
  key = jax.random.PRNGKey(0)

  # (num_points, active_order): second case exercises the pad path (n % 8 != 0)
  # and the reduced coefficient-row streaming for low orders.
  for num_points, order in ((256, 3), (250, 1)):
    case_key = jax.random.fold_in(key, num_points)
    k_dir, k_dc, k_rest = jax.random.split(case_key, 3)

    u = jax.random.uniform(k_dir, (num_points, 2), dtype=jnp.float32)
    directions = jnp.stack([u[:, 0] * jnp.pi, u[:, 1] * 2.0 * jnp.pi], axis=-1)

    # Module __init__ uses zeros; use small random values so the output is
    # non-trivial (zeros would trivially produce all-zeros).
    sh_coeffs_dc = 0.1 * jax.random.normal(k_dc, (num_points, 3, 1), jnp.float32)
    sh_coeffs_rest = 0.1 * jax.random.normal(
        k_rest, (num_points, 3, NUM_COEFFS - 1), jnp.float32)

    out = spherical_harmonics_forward(directions, sh_coeffs_dc, sh_coeffs_rest,
                                      active_order=order)
    out = jax.block_until_ready(out)

    ref = _reference_forward(directions, sh_coeffs_dc, sh_coeffs_rest,
                             active_order=order)
    assert out.shape == (num_points, 3)
    assert jnp.allclose(out, ref, atol=2e-5, rtol=2e-5)

  # TODO(synk): reference forward() is internally inconsistent (undefined
  # `self.order` / `self.sh_coeffs`); standard per-point SH radiance used.
  print("KERNEL_OK")
</pallas_src>

<mosaic_0001>
module attributes {stable_mosaic.version = 11 : i64} {
  func.func @_sh_kernel(%arg0: i32, %arg1: memref<8x32xf32, #tpu.memory_space<vmem>>, %arg2: memref<8x32xf32, #tpu.memory_space<vmem>>, %arg3: memref<3x8x32xf32, #tpu.memory_space<vmem>>, %arg4: memref<45x8x32xf32, #tpu.memory_space<vmem>>, %arg5: memref<3x8x32xf32, #tpu.memory_space<vmem>>) attributes {dimension_semantics = [#tpu.dimension_semantics<parallel>], iteration_bounds = array<i64: 1>, scalar_prefetch = 0 : i64, scratch_operands = 0 : i64, tpu.core_type = #tpu.core_type<tc>, window_params = [{transform_indices = @transform_0, window_bounds = array<i64: 8, 32>}, {transform_indices = @transform_1, window_bounds = array<i64: 8, 32>}, {transform_indices = @transform_2, window_bounds = array<i64: 3, 8, 32>}, {transform_indices = @transform_3, window_bounds = array<i64: 45, 8, 32>}, {transform_indices = @transform_4, window_bounds = array<i64: 3, 8, 32>}]} {
    %c0 = arith.constant 0 : index
    %c0_0 = arith.constant 0 : index
    %0 = vector.load %arg1[%c0, %c0_0] : memref<8x32xf32, #tpu.memory_space<vmem>>, vector<8x32xf32>
    %c0_1 = arith.constant 0 : index
    %c0_2 = arith.constant 0 : index
    %1 = vector.load %arg2[%c0_1, %c0_2] : memref<8x32xf32, #tpu.memory_space<vmem>>, vector<8x32xf32>
    %2 = math.sin %0 : vector<8x32xf32>
    %3 = math.cos %0 : vector<8x32xf32>
    %4 = math.sin %1 : vector<8x32xf32>
    %5 = math.cos %1 : vector<8x32xf32>
    %6 = arith.mulf %2, %5 : vector<8x32xf32>
    %7 = arith.mulf %2, %4 : vector<8x32xf32>
    %c0_3 = arith.constant 0 : index
    %c0_4 = arith.constant 0 : index
    %c0_5 = arith.constant 0 : index
    %8 = vector.load %arg3[%c0_3, %c0_4, %c0_5] : memref<3x8x32xf32, #tpu.memory_space<vmem>>, vector<1x8x32xf32>
    %9 = vector.shape_cast %8 : vector<1x8x32xf32> to vector<8x32xf32>
    %cst = arith.constant 0.282094806 : f32
    %10 = vector.broadcast %cst : f32 to vector<8x32xf32>
    %11 = arith.mulf %9, %10 : vector<8x32xf32>
    %c1 = arith.constant 1 : index
    %c0_6 = arith.constant 0 : index
    %c0_7 = arith.constant 0 : index
    %12 = vector.load %arg3[%c1, %c0_6, %c0_7] : memref<3x8x32xf32, #tpu.memory_space<vmem>>, vector<1x8x32xf32>
    %13 = vector.shape_cast %12 : vector<1x8x32xf32> to vector<8x32xf32>
    %cst_8 = arith.constant 0.282094806 : f32
    %14 = vector.broadcast %cst_8 : f32 to vector<8x32xf32>
    %15 = arith.mulf %13, %14 : vector<8x32xf32>
    %c2 = arith.constant 2 : index
    %c0_9 = arith.constant 0 : index
    %c0_10 = arith.constant 0 : index
    %16 = vector.load %arg3[%c2, %c0_9, %c0_10] : memref<3x8x32xf32, #tpu.memory_space<vmem>>, vector<1x8x32xf32>
    %17 = vector.shape_cast %16 : vector<1x8x32xf32> to vector<8x32xf32>
    %cst_11 = arith.constant 0.282094806 : f32
    %18 = vector.broadcast %cst_11 : f32 to vector<8x32xf32>
    %19 = arith.mulf %17, %18 : vector<8x32xf32>
    %cst_12 = arith.constant -0.488602519 : f32
    %20 = vector.broadcast %cst_12 : f32 to vector<8x32xf32>
    %21 = arith.mulf %20, %7 : vector<8x32xf32>
    %c0_13 = arith.constant 0 : index
    %c0_14 = arith.constant 0 : index
    %c0_15 = arith.constant 0 : index
    %22 = vector.load %arg4[%c0_13, %c0_14, %c0_15] : memref<45x8x32xf32, #tpu.memory_space<vmem>>, vector<1x8x32xf32>
    %23 = vector.shape_cast %22 : vector<1x8x32xf32> to vector<8x32xf32>
    %24 = arith.mulf %23, %21 : vector<8x32xf32>
    %25 = arith.addf %11, %24 : vector<8x32xf32>
    %c1_16 = arith.constant 1 : index
    %c0_17 = arith.constant 0 : index
    %c0_18 = arith.constant 0 : index
    %26 = vector.load %arg4[%c1_16, %c0_17, %c0_18] : memref<45x8x32xf32, #tpu.memory_space<vmem>>, vector<1x8x32xf32>
    %27 = vector.shape_cast %26 : vector<1x8x32xf32> to vector<8x32xf32>
    %28 = arith.mulf %27, %21 : vector<8x32xf32>
    %29 = arith.addf %15, %28 : vector<8x32xf32>
    %c2_19 = arith.constant 2 : index
    %c0_20 = arith.constant 0 : index
    %c0_21 = arith.constant 0 : index
    %30 = vector.load %arg4[%c2_19, %c0_20, %c0_21] : memref<45x8x32xf32, #tpu.memory_space<vmem>>, vector<1x8x32xf32>
    %31 = vector.shape_cast %30 : vector<1x8x32xf32> to vector<8x32xf32>
    %32 = arith.mulf %31, %21 : vector<8x32xf32>
    %33 = arith.addf %19, %32 : vector<8x32xf32>
    %cst_22 = arith.constant 0.488602519 : f32
    %34 = vector.broadcast %cst_22 : f32 to vector<8x32xf32>
    %35 = arith.mulf %34, %3 : vector<8x32xf32>
    %c3 = arith.constant 3 : index
    %c0_23 = arith.constant 0 : index
    %c0_24 = arith.constant 0 : index
    %36 = vector.load %arg4[%c3, %c0_23, %c0_24] : memref<45x8x32xf32, #tpu.memory_space<vmem>>, vector<1x8x32xf32>
    %37 = vector.shape_cast %36 : vector<1x8x32xf32> to vector<8x32xf32>
    %38 = arith.mulf %37, %35 : vector<8x32xf32>
    %39 = arith.addf %25, %38 : vector<8x32xf32>
    %c4 = arith.constant 4 : index
    %c0_25 = arith.constant 0 : index
    %c0_26 = arith.constant 0 : index
    %40 = vector.load %arg4[%c4, %c0_25, %c0_26] : memref<45x8x32xf32, #tpu.memory_space<vmem>>, vector<1x8x32xf32>
    %41 = vector.shape_cast %40 : vector<1x8x32xf32> to vector<8x32xf32>
    %42 = arith.mulf %41, %35 : vector<8x32xf32>
    %43 = arith.addf %29, %42 : vector<8x32xf32>
    %c5 = arith.constant 5 : index
    %c0_27 = arith.constant 0 : index
    %c0_28 = arith.constant 0 : index
    %44 = vector.load %arg4[%c5, %c0_27, %c0_28] : memref<45x8x32xf32, #tpu.memory_space<vmem>>, vector<1x8x32xf32>
    %45 = vector.shape_cast %44 : vector<1x8x32xf32> to vector<8x32xf32>
    %46 = arith.mulf %45, %35 : vector<8x32xf32>
    %47 = arith.addf %33, %46 : vector<8x32xf32>
    %cst_29 = arith.constant -0.488602519 : f32
    %48 = vector.broadcast %cst_29 : f32 to vector<8x32xf32>
    %49 = arith.mulf %48, %6 : vector<8x32xf32>
    %c6 = arith.constant 6 : index
    %c0_30 = arith.constant 0 : index
    %c0_31 = arith.constant 0 : index
    %50 = vector.load %arg4[%c6, %c0_30, %c0_31] : memref<45x8x32xf32, #tpu.memory_space<vmem>>, vector<1x8x32xf32>
    %51 = vector.shape_cast %50 : vector<1x8x32xf32> to vector<8x32xf32>
    %52 = arith.mulf %51, %49 : vector<8x32xf32>
    %53 = arith.addf %39, %52 : vector<8x32xf32>
    %c7 = arith.constant 7 : index
    %c0_32 = arith.constant 0 : index
    %c0_33 = arith.constant 0 : index
    %54 = vector.load %arg4[%c7, %c0_32, %c0_33] : memref<45x8x32xf32, #tpu.memory_space<vmem>>, vector<1x8x32xf32>
    %55 = vector.shape_cast %54 : vector<1x8x32xf32> to vector<8x32xf32>
    %56 = arith.mulf %55, %49 : vector<8x32xf32>
    %57 = arith.addf %43, %56 : vector<8x32xf32>
    %c8 = arith.constant 8 : index
    %c0_34 = arith.constant 0 : index
    %c0_35 = arith.constant 0 : index
    %58 = vector.load %arg4[%c8, %c0_34, %c0_35] : memref<45x8x32xf32, #tpu.memory_space<vmem>>, vector<1x8x32xf32>
    %59 = vector.shape_cast %58 : vector<1x8x32xf32> to vector<8x32xf32>
    %60 = arith.mulf %59, %49 : vector<8x32xf32>
    %61 = arith.addf %47, %60 : vector<8x32xf32>
    %62 = arith.mulf %6, %6 : vector<8x32xf32>
    %63 = arith.mulf %7, %7 : vector<8x32xf32>
    %64 = arith.mulf %3, %3 : vector<8x32xf32>
    %65 = arith.mulf %6, %7 : vector<8x32xf32>
    %66 = arith.mulf %7, %3 : vector<8x32xf32>
    %67 = arith.mulf %6, %3 : vector<8x32xf32>
    %cst_36 = arith.constant 1.09254849 : f32
    %68 = vector.broadcast %cst_36 : f32 to vector<8x32xf32>
    %69 = arith.mulf %68, %65 : vector<8x32xf32>
    %c9 = arith.constant 9 : index
    %c0_37 = arith.constant 0 : index
    %c0_38 = arith.constant 0 : index
    %70 = vector.load %arg4[%c9, %c0_37, %c0_38] : memref<45x8x32xf32, #tpu.memory_space<vmem>>, vector<1x8x32xf32>
    %71 = vector.shape_cast %70 : vector<1x8x32xf32> to vector<8x32xf32>
    %72 = arith.mulf %71, %69 : vector<8x32xf32>
    %73 = arith.addf %53, %72 : vector<8x32xf32>
    %c10 = arith.constant 10 : index
    %c0_39 = arith.constant 0 : index
    %c0_40 = arith.constant 0 : index
    %74 = vector.load %arg4[%c10, %c0_39, %c0_40] : memref<45x8x32xf32, #tpu.memory_space<vmem>>, vector<1x8x32xf32>
    %75 = vector.shape_cast %74 : vector<1x8x32xf32> to vector<8x32xf32>
    %76 = arith.mulf %75, %69 : vector<8x32xf32>
    %77 = arith.addf %57, %76 : vector<8x32xf32>
    %c11 = arith.constant 11 : index
    %c0_41 = arith.constant 0 : index
    %c0_42 = arith.constant 0 : index
    %78 = vector.load %arg4[%c11, %c0_41, %c0_42] : memref<45x8x32xf32, #tpu.memory_space<vmem>>, vector<1x8x32xf32>
    %79 = vector.shape_cast %78 : vector<1x8x32xf32> to vector<8x32xf32>
    %80 = arith.mulf %79, %69 : vector<8x32xf32>
    %81 = arith.addf %61, %80 : vector<8x32xf32>
    %cst_43 = arith.constant -1.09254849 : f32
    %82 = vector.broadcast %cst_43 : f32 to vector<8x32xf32>
    %83 = arith.mulf %82, %66 : vector<8x32xf32>
    %c12 = arith.constant 12 : index
    %c0_44 = arith.constant 0 : index
    %c0_45 = arith.constant 0 : index
    %84 = vector.load %arg4[%c12, %c0_44, %c0_45] : memref<45x8x32xf32, #tpu.memory_space<vmem>>, vector<1x8x32xf32>
    %85 = vector.shape_cast %84 : vector<1x8x32xf32> to vector<8x32xf32>
    %86 = arith.mulf %85, %83 : vector<8x32xf32>
    %87 = arith.addf %73, %86 : vector<8x32xf32>
    %c13 = arith.constant 13 : index
    %c0_46 = arith.constant 0 : index
    %c0_47 = arith.constant 0 : index
    %88 = vector.load %arg4[%c13, %c0_46, %c0_47] : memref<45x8x32xf32, #tpu.memory_space<vmem>>, vector<1x8x32xf32>
    %89 = vector.shape_cast %88 : vector<1x8x32xf32> to vector<8x32xf32>
    %90 = arith.mulf %89, %83 : vector<8x32xf32>
    %91 = arith.addf %77, %90 : vector<8x32xf32>
    %c14 = arith.constant 14 : index
    %c0_48 = arith.constant 0 : index
    %c0_49 = arith.constant 0 : index
    %92 = vector.load %arg4[%c14, %c0_48, %c0_49] : memref<45x8x32xf32, #tpu.memory_space<vmem>>, vector<1x8x32xf32>
    %93 = vector.shape_cast %92 : vector<1x8x32xf32> to vector<8x32xf32>
    %94 = arith.mulf %93, %83 : vector<8x32xf32>
    %95 = arith.addf %81, %94 : vector<8x32xf32>
    %cst_50 = arith.constant 2.000000e+00 : f32
    %96 = vector.broadcast %cst_50 : f32 to vector<8x32xf32>
    %97 = arith.mulf %96, %64 : vector<8x32xf32>
    %98 = arith.subf %97, %62 : vector<8x32xf32>
    %99 = arith.subf %98, %63 : vector<8x32xf32>
    %cst_51 = arith.constant 0.31539157 : f32
    %100 = vector.broadcast %cst_51 : f32 to vector<8x32xf32>
    %101 = arith.mulf %100, %99 : vector<8x32xf32>
    %c15 = arith.constant 15 : index
    %c0_52 = arith.constant 0 : index
    %c0_53 = arith.constant 0 : index
    %102 = vector.load %arg4[%c15, %c0_52, %c0_53] : memref<45x8x32xf32, #tpu.memory_space<vmem>>, vector<1x8x32xf32>
    %103 = vector.shape_cast %102 : vector<1x8x32xf32> to vector<8x32xf32>
    %104 = arith.mulf %103, %101 : vector<8x32xf32>
    %105 = arith.addf %87, %104 : vector<8x32xf32>
    %c16 = arith.constant 16 : index
    %c0_54 = arith.constant 0 : index
    %c0_55 = arith.constant 0 : index
    %106 = vector.load %arg4[%c16, %c0_54, %c0_55] : memref<45x8x32xf32, #tpu.memory_space<vmem>>, vector<1x8x32xf32>
    %107 = vector.shape_cast %106 : vector<1x8x32xf32> to vector<8x32xf32>
    %108 = arith.mulf %107, %101 : vector<8x32xf32>
    %109 = arith.addf %91, %108 : vector<8x32xf32>
    %c17 = arith.constant 17 : index
    %c0_56 = arith.constant 0 : index
    %c0_57 = arith.constant 0 : index
    %110 = vector.load %arg4[%c17, %c0_56, %c0_57] : memref<45x8x32xf32, #tpu.memory_space<vmem>>, vector<1x8x32xf32>
    %111 = vector.shape_cast %110 : vector<1x8x32xf32> to vector<8x32xf32>
    %112 = arith.mulf %111, %101 : vector<8x32xf32>
    %113 = arith.addf %95, %112 : vector<8x32xf32>
    %cst_58 = arith.constant -1.09254849 : f32
    %114 = vector.broadcast %cst_58 : f32 to vector<8x32xf32>
    %115 = arith.mulf %114, %67 : vector<8x32xf32>
    %c18 = arith.constant 18 : index
    %c0_59 = arith.constant 0 : index
    %c0_60 = arith.constant 0 : index
    %116 = vector.load %arg4[%c18, %c0_59, %c0_60] : memref<45x8x32xf32, #tpu.memory_space<vmem>>, vector<1x8x32xf32>
    %117 = vector.shape_cast %116 : vector<1x8x32xf32> to vector<8x32xf32>
    %118 = arith.mulf %117, %115 : vector<8x32xf32>
    %119 = arith.addf %105, %118 : vector<8x32xf32>
    %c19 = arith.constant 19 : index
    %c0_61 = arith.constant 0 : index
    %c0_62 = arith.constant 0 : index
    %120 = vector.load %arg4[%c19, %c0_61, %c0_62] : memref<45x8x32xf32, #tpu.memory_space<vmem>>, vector<1x8x32xf32>
    %121 = vector.shape_cast %120 : vector<1x8x32xf32> to vector<8x32xf32>
    %122 = arith.mulf %121, %115 : vector<8x32xf32>
    %123 = arith.addf %109, %122 : vector<8x32xf32>
    %c20 = arith.constant 20 : index
    %c0_63 = arith.constant 0 : index
    %c0_64 = arith.constant 0 : index
    %124 = vector.load %arg4[%c20, %c0_63, %c0_64] : memref<45x8x32xf32, #tpu.memory_space<vmem>>, vector<1x8x32xf32>
    %125 = vector.shape_cast %124 : vector<1x8x32xf32> to vector<8x32xf32>
    %126 = arith.mulf %125, %115 : vector<8x32xf32>
    %127 = arith.addf %113, %126 : vector<8x32xf32>
    %128 = arith.subf %62, %63 : vector<8x32xf32>
    %cst_65 = arith.constant 0.546274245 : f32
    %129 = vector.broadcast %cst_65 : f32 to vector<8x32xf32>
    %130 = arith.mulf %129, %128 : vector<8x32xf32>
    %c21 = arith.constant 21 : index
    %c0_66 = arith.constant 0 : index
    %c0_67 = arith.constant 0 : index
    %131 = vector.load %arg4[%c21, %c0_66, %c0_67] : memref<45x8x32xf32, #tpu.memory_space<vmem>>, vector<1x8x32xf32>
    %132 = vector.shape_cast %131 : vector<1x8x32xf32> to vector<8x32xf32>
    %133 = arith.mulf %132, %130 : vector<8x32xf32>
    %134 = arith.addf %119, %133 : vector<8x32xf32>
    %c22 = arith.constant 22 : index
    %c0_68 = arith.constant 0 : index
    %c0_69 = arith.constant 0 : index
    %135 = vector.load %arg4[%c22, %c0_68, %c0_69] : memref<45x8x32xf32, #tpu.memory_space<vmem>>, vector<1x8x32xf32>
    %136 = vector.shape_cast %135 : vector<1x8x32xf32> to vector<8x32xf32>
    %137 = arith.mulf %136, %130 : vector<8x32xf32>
    %138 = arith.addf %123, %137 : vector<8x32xf32>
    %c23 = arith.constant 23 : index
    %c0_70 = arith.constant 0 : index
    %c0_71 = arith.constant 0 : index
    %139 = vector.load %arg4[%c23, %c0_70, %c0_71] : memref<45x8x32xf32, #tpu.memory_space<vmem>>, vector<1x8x32xf32>
    %140 = vector.shape_cast %139 : vector<1x8x32xf32> to vector<8x32xf32>
    %141 = arith.mulf %140, %130 : vector<8x32xf32>
    %142 = arith.addf %127, %141 : vector<8x32xf32>
    %cst_72 = arith.constant -0.590043604 : f32
    %143 = vector.broadcast %cst_72 : f32 to vector<8x32xf32>
    %144 = arith.mulf %143, %7 : vector<8x32xf32>
    %cst_73 = arith.constant 3.000000e+00 : f32
    %145 = vector.broadcast %cst_73 : f32 to vector<8x32xf32>
    %146 = arith.mulf %145, %62 : vector<8x32xf32>
    %147 = arith.subf %146, %63 : vector<8x32xf32>
    %148 = arith.mulf %144, %147 : vector<8x32xf32>
    %c24 = arith.constant 24 : index
    %c0_74 = arith.constant 0 : index
    %c0_75 = arith.constant 0 : index
    %149 = vector.load %arg4[%c24, %c0_74, %c0_75] : memref<45x8x32xf32, #tpu.memory_space<vmem>>, vector<1x8x32xf32>
    %150 = vector.shape_cast %149 : vector<1x8x32xf32> to vector<8x32xf32>
    %151 = arith.mulf %150, %148 : vector<8x32xf32>
    %152 = arith.addf %134, %151 : vector<8x32xf32>
    %c25 = arith.constant 25 : index
    %c0_76 = arith.constant 0 : index
    %c0_77 = arith.constant 0 : index
    %153 = vector.load %arg4[%c25, %c0_76, %c0_77] : memref<45x8x32xf32, #tpu.memory_space<vmem>>, vector<1x8x32xf32>
    %154 = vector.shape_cast %153 : vector<1x8x32xf32> to vector<8x32xf32>
    %155 = arith.mulf %154, %148 : vector<8x32xf32>
    %156 = arith.addf %138, %155 : vector<8x32xf32>
    %c26 = arith.constant 26 : index
    %c0_78 = arith.constant 0 : index
    %c0_79 = arith.constant 0 : index
    %157 = vector.load %arg4[%c26, %c0_78, %c0_79] : memref<45x8x32xf32, #tpu.memory_space<vmem>>, vector<1x8x32xf32>
    %158 = vector.shape_cast %157 : vector<1x8x32xf32> to vector<8x32xf32>
    %159 = arith.mulf %158, %148 : vector<8x32xf32>
    %160 = arith.addf %142, %159 : vector<8x32xf32>
    %cst_80 = arith.constant 2.89061141 : f32
    %161 = vector.broadcast %cst_80 : f32 to vector<8x32xf32>
    %162 = arith.mulf %161, %65 : vector<8x32xf32>
    %163 = arith.mulf %162, %3 : vector<8x32xf32>
    %c27 = arith.constant 27 : index
    %c0_81 = arith.constant 0 : index
    %c0_82 = arith.constant 0 : index
    %164 = vector.load %arg4[%c27, %c0_81, %c0_82] : memref<45x8x32xf32, #tpu.memory_space<vmem>>, vector<1x8x32xf32>
    %165 = vector.shape_cast %164 : vector<1x8x32xf32> to vector<8x32xf32>
    %166 = arith.mulf %165, %163 : vector<8x32xf32>
    %167 = arith.addf %152, %166 : vector<8x32xf32>
    %c28 = arith.constant 28 : index
    %c0_83 = arith.constant 0 : index
    %c0_84 = arith.constant 0 : index
    %168 = vector.load %arg4[%c28, %c0_83, %c0_84] : memref<45x8x32xf32, #tpu.memory_space<vmem>>, vector<1x8x32xf32>
    %169 = vector.shape_cast %168 : vector<1x8x32xf32> to vector<8x32xf32>
    %170 = arith.mulf %169, %163 : vector<8x32xf32>
    %171 = arith.addf %156, %170 : vector<8x32xf32>
    %c29 = arith.constant 29 : index
    %c0_85 = arith.constant 0 : index
    %c0_86 = arith.constant 0 : index
    %172 = vector.load %arg4[%c29, %c0_85, %c0_86] : memref<45x8x32xf32, #tpu.memory_space<vmem>>, vector<1x8x32xf32>
    %173 = vector.shape_cast %172 : vector<1x8x32xf32> to vector<8x32xf32>
    %174 = arith.mulf %173, %163 : vector<8x32xf32>
    %175 = arith.addf %160, %174 : vector<8x32xf32>
    %cst_87 = arith.constant -0.457045794 : f32
    %176 = vector.broadcast %cst_87 : f32 to vector<8x32xf32>
    %177 = arith.mulf %176, %7 : vector<8x32xf32>
    %cst_88 = arith.constant 4.000000e+00 : f32
    %178 = vector.broadcast %cst_88 : f32 to vector<8x32xf32>
    %179 = arith.mulf %178, %64 : vector<8x32xf32>
    %180 = arith.subf %179, %62 : vector<8x32xf32>
    %181 = arith.subf %180, %63 : vector<8x32xf32>
    %182 = arith.mulf %177, %181 : vector<8x32xf32>
    %c30 = arith.constant 30 : index
    %c0_89 = arith.constant 0 : index
    %c0_90 = arith.constant 0 : index
    %183 = vector.load %arg4[%c30, %c0_89, %c0_90] : memref<45x8x32xf32, #tpu.memory_space<vmem>>, vector<1x8x32xf32>
    %184 = vector.shape_cast %183 : vector<1x8x32xf32> to vector<8x32xf32>
    %185 = arith.mulf %184, %182 : vector<8x32xf32>
    %186 = arith.addf %167, %185 : vector<8x32xf32>
    %c31 = arith.constant 31 : index
    %c0_91 = arith.constant 0 : index
    %c0_92 = arith.constant 0 : index
    %187 = vector.load %arg4[%c31, %c0_91, %c0_92] : memref<45x8x32xf32, #tpu.memory_space<vmem>>, vector<1x8x32xf32>
    %188 = vector.shape_cast %187 : vector<1x8x32xf32> to vector<8x32xf32>
    %189 = arith.mulf %188, %182 : vector<8x32xf32>
    %190 = arith.addf %171, %189 : vector<8x32xf32>
    %c32 = arith.constant 32 : index
    %c0_93 = arith.constant 0 : index
    %c0_94 = arith.constant 0 : index
    %191 = vector.load %arg4[%c32, %c0_93, %c0_94] : memref<45x8x32xf32, #tpu.memory_space<vmem>>, vector<1x8x32xf32>
    %192 = vector.shape_cast %191 : vector<1x8x32xf32> to vector<8x32xf32>
    %193 = arith.mulf %192, %182 : vector<8x32xf32>
    %194 = arith.addf %175, %193 : vector<8x32xf32>
    %cst_95 = arith.constant 0.373176336 : f32
    %195 = vector.broadcast %cst_95 : f32 to vector<8x32xf32>
    %196 = arith.mulf %195, %3 : vector<8x32xf32>
    %cst_96 = arith.constant 2.000000e+00 : f32
    %197 = vector.broadcast %cst_96 : f32 to vector<8x32xf32>
    %198 = arith.mulf %197, %64 : vector<8x32xf32>
    %cst_97 = arith.constant 3.000000e+00 : f32
    %199 = vector.broadcast %cst_97 : f32 to vector<8x32xf32>
    %200 = arith.mulf %199, %62 : vector<8x32xf32>
    %201 = arith.subf %198, %200 : vector<8x32xf32>
    %cst_98 = arith.constant 3.000000e+00 : f32
    %202 = vector.broadcast %cst_98 : f32 to vector<8x32xf32>
    %203 = arith.mulf %202, %63 : vector<8x32xf32>
    %204 = arith.subf %201, %203 : vector<8x32xf32>
    %205 = arith.mulf %196, %204 : vector<8x32xf32>
    %c33 = arith.constant 33 : index
    %c0_99 = arith.constant 0 : index
    %c0_100 = arith.constant 0 : index
    %206 = vector.load %arg4[%c33, %c0_99, %c0_100] : memref<45x8x32xf32, #tpu.memory_space<vmem>>, vector<1x8x32xf32>
    %207 = vector.shape_cast %206 : vector<1x8x32xf32> to vector<8x32xf32>
    %208 = arith.mulf %207, %205 : vector<8x32xf32>
    %209 = arith.addf %186, %208 : vector<8x32xf32>
    %c34 = arith.constant 34 : index
    %c0_101 = arith.constant 0 : index
    %c0_102 = arith.constant 0 : index
    %210 = vector.load %arg4[%c34, %c0_101, %c0_102] : memref<45x8x32xf32, #tpu.memory_space<vmem>>, vector<1x8x32xf32>
    %211 = vector.shape_cast %210 : vector<1x8x32xf32> to vector<8x32xf32>
    %212 = arith.mulf %211, %205 : vector<8x32xf32>
    %213 = arith.addf %190, %212 : vector<8x32xf32>
    %c35 = arith.constant 35 : index
    %c0_103 = arith.constant 0 : index
    %c0_104 = arith.constant 0 : index
    %214 = vector.load %arg4[%c35, %c0_103, %c0_104] : memref<45x8x32xf32, #tpu.memory_space<vmem>>, vector<1x8x32xf32>
    %215 = vector.shape_cast %214 : vector<1x8x32xf32> to vector<8x32xf32>
    %216 = arith.mulf %215, %205 : vector<8x32xf32>
    %217 = arith.addf %194, %216 : vector<8x32xf32>
    %cst_105 = arith.constant -0.457045794 : f32
    %218 = vector.broadcast %cst_105 : f32 to vector<8x32xf32>
    %219 = arith.mulf %218, %6 : vector<8x32xf32>
    %cst_106 = arith.constant 4.000000e+00 : f32
    %220 = vector.broadcast %cst_106 : f32 to vector<8x32xf32>
    %221 = arith.mulf %220, %64 : vector<8x32xf32>
    %222 = arith.subf %221, %62 : vector<8x32xf32>
    %223 = arith.subf %222, %63 : vector<8x32xf32>
    %224 = arith.mulf %219, %223 : vector<8x32xf32>
    %c36 = arith.constant 36 : index
    %c0_107 = arith.constant 0 : index
    %c0_108 = arith.constant 0 : index
    %225 = vector.load %arg4[%c36, %c0_107, %c0_108] : memref<45x8x32xf32, #tpu.memory_space<vmem>>, vector<1x8x32xf32>
    %226 = vector.shape_cast %225 : vector<1x8x32xf32> to vector<8x32xf32>
    %227 = arith.mulf %226, %224 : vector<8x32xf32>
    %228 = arith.addf %209, %227 : vector<8x32xf32>
    %c37 = arith.constant 37 : index
    %c0_109 = arith.constant 0 : index
    %c0_110 = arith.constant 0 : index
    %229 = vector.load %arg4[%c37, %c0_109, %c0_110] : memref<45x8x32xf32, #tpu.memory_space<vmem>>, vector<1x8x32xf32>
    %230 = vector.shape_cast %229 : vector<1x8x32xf32> to vector<8x32xf32>
    %231 = arith.mulf %230, %224 : vector<8x32xf32>
    %232 = arith.addf %213, %231 : vector<8x32xf32>
    %c38 = arith.constant 38 : index
    %c0_111 = arith.constant 0 : index
    %c0_112 = arith.constant 0 : index
    %233 = vector.load %arg4[%c38, %c0_111, %c0_112] : memref<45x8x32xf32, #tpu.memory_space<vmem>>, vector<1x8x32xf32>
    %234 = vector.shape_cast %233 : vector<1x8x32xf32> to vector<8x32xf32>
    %235 = arith.mulf %234, %224 : vector<8x32xf32>
    %236 = arith.addf %217, %235 : vector<8x32xf32>
    %cst_113 = arith.constant 1.44530571 : f32
    %237 = vector.broadcast %cst_113 : f32 to vector<8x32xf32>
    %238 = arith.mulf %237, %3 : vector<8x32xf32>
    %239 = arith.subf %62, %63 : vector<8x32xf32>
    %240 = arith.mulf %238, %239 : vector<8x32xf32>
    %c39 = arith.constant 39 : index
    %c0_114 = arith.constant 0 : index
    %c0_115 = arith.constant 0 : index
    %241 = vector.load %arg4[%c39, %c0_114, %c0_115] : memref<45x8x32xf32, #tpu.memory_space<vmem>>, vector<1x8x32xf32>
    %242 = vector.shape_cast %241 : vector<1x8x32xf32> to vector<8x32xf32>
    %243 = arith.mulf %242, %240 : vector<8x32xf32>
    %244 = arith.addf %228, %243 : vector<8x32xf32>
    %c40 = arith.constant 40 : index
    %c0_116 = arith.constant 0 : index
    %c0_117 = arith.constant 0 : index
    %245 = vector.load %arg4[%c40, %c0_116, %c0_117] : memref<45x8x32xf32, #tpu.memory_space<vmem>>, vector<1x8x32xf32>
    %246 = vector.shape_cast %245 : vector<1x8x32xf32> to vector<8x32xf32>
    %247 = arith.mulf %246, %240 : vector<8x32xf32>
    %248 = arith.addf %232, %247 : vector<8x32xf32>
    %c41 = arith.constant 41 : index
    %c0_118 = arith.constant 0 : index
    %c0_119 = arith.constant 0 : index
    %249 = vector.load %arg4[%c41, %c0_118, %c0_119] : memref<45x8x32xf32, #tpu.memory_space<vmem>>, vector<1x8x32xf32>
    %250 = vector.shape_cast %249 : vector<1x8x32xf32> to vector<8x32xf32>
    %251 = arith.mulf %250, %240 : vector<8x32xf32>
    %252 = arith.addf %236, %251 : vector<8x32xf32>
    %cst_120 = arith.constant -0.590043604 : f32
    %253 = vector.broadcast %cst_120 : f32 to vector<8x32xf32>
    %254 = arith.mulf %253, %6 : vector<8x32xf32>
    %cst_121 = arith.constant 3.000000e+00 : f32
    %255 = vector.broadcast %cst_121 : f32 to vector<8x32xf32>
    %256 = arith.mulf %255, %63 : vector<8x32xf32>
    %257 = arith.subf %62, %256 : vector<8x32xf32>
    %258 = arith.mulf %254, %257 : vector<8x32xf32>
    %c42 = arith.constant 42 : index
    %c0_122 = arith.constant 0 : index
    %c0_123 = arith.constant 0 : index
    %259 = vector.load %arg4[%c42, %c0_122, %c0_123] : memref<45x8x32xf32, #tpu.memory_space<vmem>>, vector<1x8x32xf32>
    %260 = vector.shape_cast %259 : vector<1x8x32xf32> to vector<8x32xf32>
    %261 = arith.mulf %260, %258 : vector<8x32xf32>
    %262 = arith.addf %244, %261 : vector<8x32xf32>
    %c43 = arith.constant 43 : index
    %c0_124 = arith.constant 0 : index
    %c0_125 = arith.constant 0 : index
    %263 = vector.load %arg4[%c43, %c0_124, %c0_125] : memref<45x8x32xf32, #tpu.memory_space<vmem>>, vector<1x8x32xf32>
    %264 = vector.shape_cast %263 : vector<1x8x32xf32> to vector<8x32xf32>
    %265 = arith.mulf %264, %258 : vector<8x32xf32>
    %266 = arith.addf %248, %265 : vector<8x32xf32>
    %c44 = arith.constant 44 : index
    %c0_126 = arith.constant 0 : index
    %c0_127 = arith.constant 0 : index
    %267 = vector.load %arg4[%c44, %c0_126, %c0_127] : memref<45x8x32xf32, #tpu.memory_space<vmem>>, vector<1x8x32xf32>
    %268 = vector.shape_cast %267 : vector<1x8x32xf32> to vector<8x32xf32>
    %269 = arith.mulf %268, %258 : vector<8x32xf32>
    %270 = arith.addf %252, %269 : vector<8x32xf32>
    %c0_128 = arith.constant 0 : index
    %c0_129 = arith.constant 0 : index
    %c0_130 = arith.constant 0 : index
    %271 = vector.load %arg5[%c0_128, %c0_129, %c0_130] : memref<3x8x32xf32, #tpu.memory_space<vmem>>, vector<1x8x32xf32>
    %272 = vector.shape_cast %271 : vector<1x8x32xf32> to vector<8x32xf32>
    %273 = vector.shape_cast %262 : vector<8x32xf32> to vector<1x8x32xf32>
    tpu.vector_store %arg5[%c0_128, %c0_129, %c0_130], %273 {strides = array<i32>} : memref<3x8x32xf32, #tpu.memory_space<vmem>>, vector<1x8x32xf32>,
    %c1_131 = arith.constant 1 : index
    %c0_132 = arith.constant 0 : index
    %c0_133 = arith.constant 0 : index
    %274 = vector.load %arg5[%c1_131, %c0_132, %c0_133] : memref<3x8x32xf32, #tpu.memory_space<vmem>>, vector<1x8x32xf32>
    %275 = vector.shape_cast %274 : vector<1x8x32xf32> to vector<8x32xf32>
    %276 = vector.shape_cast %266 : vector<8x32xf32> to vector<1x8x32xf32>
    tpu.vector_store %arg5[%c1_131, %c0_132, %c0_133], %276 {strides = array<i32>} : memref<3x8x32xf32, #tpu.memory_space<vmem>>, vector<1x8x32xf32>,
    %c2_134 = arith.constant 2 : index
    %c0_135 = arith.constant 0 : index
    %c0_136 = arith.constant 0 : index
    %277 = vector.load %arg5[%c2_134, %c0_135, %c0_136] : memref<3x8x32xf32, #tpu.memory_space<vmem>>, vector<1x8x32xf32>
    %278 = vector.shape_cast %277 : vector<1x8x32xf32> to vector<8x32xf32>
    %279 = vector.shape_cast %270 : vector<8x32xf32> to vector<1x8x32xf32>
    tpu.vector_store %arg5[%c2_134, %c0_135, %c0_136], %279 {strides = array<i32>} : memref<3x8x32xf32, #tpu.memory_space<vmem>>, vector<1x8x32xf32>,
    return
  }
  func.func @transform_0(%arg0: i32) -> (i32, i32) {
    %c0_i32 = arith.constant 0 : i32
    %c0_i32_0 = arith.constant 0 : i32
    return %c0_i32, %arg0 : i32, i32
  }
  func.func @transform_1(%arg0: i32) -> (i32, i32) {
    %c0_i32 = arith.constant 0 : i32
    %c0_i32_0 = arith.constant 0 : i32
    return %c0_i32, %arg0 : i32, i32
  }
  func.func @transform_2(%arg0: i32) -> (i32, i32, i32) {
    %c0_i32 = arith.constant 0 : i32
    %c0_i32_0 = arith.constant 0 : i32
    %c0_i32_1 = arith.constant 0 : i32
    return %c0_i32, %c0_i32_0, %arg0 : i32, i32, i32
  }
  func.func @transform_3(%arg0: i32) -> (i32, i32, i32) {
    %c0_i32 = arith.constant 0 : i32
    %c0_i32_0 = arith.constant 0 : i32
    %c0_i32_1 = arith.constant 0 : i32
    return %c0_i32, %c0_i32_0, %arg0 : i32, i32, i32
  }
  func.func @transform_4(%arg0: i32) -> (i32, i32, i32) {
    %c0_i32 = arith.constant 0 : i32
    %c0_i32_0 = arith.constant 0 : i32
    %c0_i32_1 = arith.constant 0 : i32
    return %c0_i32, %c0_i32_0, %arg0 : i32, i32, i32
  }
}

</mosaic_0001>

<bundles_post_ra>
// kernel: squeeze.2
= control target key start
LH: loop header
LB: loop body
LE: loop exit
PB: predicated region body
PF: predicated region fallthrough
CT: control target
= control target key end

     0   :  { %s34_s8 = smov 32   ;;  %vm7_vm0 = vcmask 261120   ;;  %s35_s11 = smov 64   ;;  %s61_s0 = inlined_call_operand.vmem [shape: f32[256], index: 0, kind: input, shape index: {}]   ;;  %s62_s1 = inlined_call_operand.vmem [shape: f32[8,32], index: 1, kind: output, shape index: {}]  }
   0x1   :  { %v4_v0 = vld [vmem:[%s61_s0] sm:$0x3]  ;;  %s33_s0 = smov 96  }
   0x2   :  { %5 = vst [vmem:[#allocation0] sm:$0x3] %v4_v0 }
   0x9   :  { %v9_v1 = vld [vmem:[#allocation0] sm:$0x3]  }
   0xa   :  { %v21_v2 = vld [vmem:[#allocation0] sm:$0x3]   ;;  %10 = vrot.lane.b32.xlu0 %v9_v1, %s33_s0 }
   0xb   :  { %22 = vrot.lane.b32.xlu1 %v21_v2, %s34_s8  ;;  %v6_v3 = vld [vmem:[#allocation0] sm:$0x3]  }
   0xc   :  { %v15_v4 = vld [vmem:[#allocation0] sm:$0x3]   ;;  %8 = vst.msk [vmem:[%s62_s1] ss:$4 sm:$0x3] %vm7_vm0, %v6_v3  }
   0xe   :  { %16 = vrot.lane.b32.xlu0 %v15_v4, %s35_s11 }
  0x7c   :  { %v11_v5 = vpop.permute.xlu0 %10  }
  0x7d   :  { %v23_v6 = vpop.permute.xlu1 %22   ;;  %27 = vst.msk [vmem:[%s62_s1 + $0x1] ss:$4 sm:$0x3] %vm7_vm0, %v11_v5  }
  0x7e   :  { %29 = vst.msk [vmem:[%s62_s1 + $0x3] ss:$4 sm:$0x3] %vm7_vm0, %v23_v6  }
  0x80   :  { %v17_v7 = vpop.permute.xlu0 %16  }
  0x81   :  { %28 = vst.msk [vmem:[%s62_s1 + $0x2] ss:$4 sm:$0x3] %vm7_vm0, %v17_v7  }

// kernel: spherical_harmonics_forward.1
= control target key start
LH: loop header
LB: loop body
LE: loop exit
PB: predicated region body
PF: predicated region fallthrough
CT: control target
= control target key end

     0   :  { %v759_v24 = vmov 683565275   ;;  %v760_v26 = vmov 2475754826   ;;  %v761_v28 = vmov 2131351028   ;;  %s1091_s0 = inlined_call_operand.vmem [shape: f32[8,32], index: 0, kind: input, shape index: {}]   ;;  %s1092_s1 = inlined_call_operand.vmem [shape: f32[8,32], index: 1, kind: input, shape index: {}]   ;;  %s1093_s2 = inlined_call_operand.vmem [shape: f32[3,8,32], index: 2, kind: input, shape index: {}]   ;;  %s1094_s3 = inlined_call_operand.vmem [shape: f32[45,8,32], index: 3, kind: input, shape index: {}]   ;;  %s1095_s4 = inlined_call_operand.vmem [shape: f32[3,8,32], index: 4, kind: output, shape index: {}]  }
   0x1   :  { %v793_v0 = vld [vmem:[%s1091_s0] sm:$0xff]  ;;  %v762_v30 = vmov 2102212464   ;;  %v763_v32 = vmov 920167782  }
   0x2   :  { %v798_v1 = vld [vmem:[%s1092_s1] sm:$0xff]  ;;  %v19_v2 = vand.u32 2147483647, %v793_v0  ;;  %v22_v3 = vand.u32 2139095040, %v793_v0  ;;  %v764_v40 = vmov 1326507024  }
   0x3   :  { %v226_v4 = vand.u32 2147483647, %v798_v1  ;;  %v229_v5 = vand.u32 2139095040, %v798_v1  ;;  %vm21_vm14 = vcmp.lt.s32.totalorder %v793_v0, 0 }
   0x4   :  { %v23_v6 = vshrl.u32 %v22_v3, 23  ;;  %v26_v7 = vand.u32 8388607, %v19_v2  ;;  %vm20_vm15 = vcmp.le.f32.partialorder %v19_v2, 0.7853982 }
   0x5   :  { %v230_v8 = vshrl.u32 %v229_v5, 23  ;;  %v233_v9 = vand.u32 8388607, %v226_v4 }
   0x6   :  { %v673_v10 = vadd.s32 4294967169, %v23_v6  ;;  %v27_v13 = vor.u32 8388608, %v26_v7 }
   0x7   :  { %v681_v11 = vadd.s32 4294967169, %v230_v8  ;;  %v234_v14 = vor.u32 8388608, %v233_v9 }
   0x8   :  { %v29_v12 = vadd.s32 1, %v673_v10  ;;  %v808_v20 = vshll.u32 %v27_v13, 8 }
   0x9   :  { %v236_v15 = vadd.s32 1, %v681_v11  ;;  %v810_v22 = vshll.u32 %v234_v14, 8 }
   0xa   :  { %vm30_vm0 = vcmp.gt.s32.totalorder %v29_v12, 0 }
   0xb   :  { %v31_v16 = vsel %vm30_vm0, %v29_v12, 0  ;;  %vm237_vm1 = vcmp.gt.s32.totalorder %v236_v15, 0  ;;  %vm228_vm0 = vcmp.lt.s32.totalorder %v798_v1, 0 }
   0xc   :  { %v32_v17 = vshrl.u32 %v31_v16, 5  ;;  %v33_v18 = vand.u32 31, %v31_v16  ;;  %v238_v19 = vsel %vm237_vm1, %v236_v15, 0  ;;  %vm227_vm1 = vcmp.le.f32.partialorder %v226_v4, 0.7853982 }
   0xd   :  { %v240_v21 = vand.u32 31, %v238_v19  ;;  %v812_v34 = vshrl.u32 %v238_v19, 5 }
   0xe   :  { %v34_v23 = vsub.s32 32, %v33_v18  ;;  %v36_v25 = vshll.u32 %v759_v24, %v33_v18  ;;  %v39_v27 = vshll.u32 %v760_v26, %v33_v18  ;;  %v42_v29 = vshll.u32 %v761_v28, %v33_v18 }
   0xf   :  { %v45_v31 = vshll.u32 %v762_v30, %v33_v18  ;;  %v48_v33 = vshll.u32 %v763_v32, %v33_v18  ;;  %vm51_vm2 = vcmp.lt.s32.totalorder %v32_v17, 1  ;;  %vm52_vm3 = vcmp.lt.s32.totalorder %v32_v17, 2 }
  0x10   :  { %v35_v35 = vshrl.u32 %v759_v24, %v34_v23  ;;  %v37_v36 = vshrl.u32 %v760_v26, %v34_v23  ;;  %v40_v37 = vshrl.u32 %v761_v28, %v34_v23  ;;  %v43_v38 = vshrl.u32 %v762_v30, %v34_v23 }
  0x11   :  { %v46_v39 = vshrl.u32 %v763_v32, %v34_v23  ;;  %v49_v41 = vshrl.u32 %v764_v40, %v34_v23  ;;  %vm54_vm4 = vcmp.lt.s32.totalorder %v32_v17, 4  ;;  %v241_v45 = vsub.s32 32, %v240_v21 }
  0x12   :  { %v38_v42 = vor.u32 %v37_v36, %v36_v25  ;;  %v41_v43 = vor.u32 %v40_v37, %v39_v27  ;;  %v44_v44 = vor.u32 %v43_v38, %v42_v29  ;;  %vm53_vm5 = vcmp.lt.s32.totalorder %v32_v17, 3 }
  0x13   :  { %v47_v46 = vor.u32 %v46_v39, %v45_v31  ;;  %v50_v47 = vor.u32 %v49_v41, %v48_v33  ;;  %v243_v48 = vshll.u32 %v759_v24, %v240_v21  ;;  %v246_v56 = vshll.u32 %v760_v26, %v240_v21 }
  0x14   :  { %v55_v49 = vsel %vm51_vm2, %v35_v35, %v38_v42  ;;  %v56_v50 = vsel %vm54_vm4, %v44_v44, 2102212464  ;;  %v59_v51 = vsel %vm51_vm2, %v38_v42, %v41_v43  ;;  %v63_v52 = vsel %vm51_vm2, %v41_v43, %v44_v44 }
  0x15   :  { %v57_v53 = vsel %vm53_vm5, %v41_v43, %v56_v50  ;;  %v60_v54 = vsel %vm54_vm4, %v47_v46, 920167782  ;;  %v64_v55 = vsel %vm54_vm4, %v50_v47, 1326507024  ;;  %v242_v59 = vshrl.u32 %v759_v24, %v241_v45 }
  0x16   :  { %v61_v57 = vsel %vm53_vm5, %v44_v44, %v60_v54  ;;  %v65_v58 = vsel %vm53_vm5, %v47_v46, %v64_v55  ;;  %v244_v60 = vshrl.u32 %v760_v26, %v241_v45  ;;  %v58_v61 = vsel %vm52_vm3, %v55_v49, %v57_v53 }
  0x17   :  { %v62_v62 = vsel %vm52_vm3, %v59_v51, %v61_v57  ;;  %v66_v63 = vsel %vm52_vm3, %v63_v52, %v65_v58  ;;  %v247_v3 = vshrl.u32 %v761_v28, %v241_v45  ;;  %v249_v11 = vshll.u32 %v761_v28, %v240_v21 }
  0x18   :  { %v821_v5 = vmul.u32.u64.low %v808_v20, %v66_v63  ;;  %v822_v6 = vmul.u32.u64.high %v808_v20, %v66_v63, %v821_v5  ;;  %v825_v7 = vmul.u32.u64.low %v808_v20, %v62_v62  ;;  %v826_v8 = vmul.u32.u64.high %v808_v20, %v62_v62, %v825_v7 }
  0x19   :  { %v245_v9 = vor.u32 %v244_v60, %v243_v48  ;;  %v248_v10 = vor.u32 %v247_v3, %v246_v56  ;;  %v250_v12 = vshrl.u32 %v762_v30, %v241_v45  ;;  %v252_v13 = vshll.u32 %v762_v30, %v240_v21 }
  0x1a   :  { %v253_v14 = vshrl.u32 %v763_v32, %v241_v45  ;;  %v255_v15 = vshll.u32 %v763_v32, %v240_v21  ;;  %v256_v16 = vshrl.u32 %v764_v40, %v241_v45  ;;  %v74_v17 = vmul.u32 %v808_v20, %v58_v61 }
  0x1b   :  { %v251_v18 = vor.u32 %v250_v12, %v249_v11  ;;  %vm258_vm6 = vcmp.lt.s32.totalorder %v812_v34, 1  ;;  %vm259_vm7 = vcmp.lt.s32.totalorder %v812_v34, 2  ;;  %vm76_vm8 = vc.u32 %v822_v6, %v825_v7 }
  0x1c   :  { %v77_v19 = vadd.s32 1, %v826_v8  ;;  %v254_v23 = vor.u32 %v253_v14, %v252_v13  ;;  %vm260_vm9 = vcmp.lt.s32.totalorder %v812_v34, 3  ;;  %v257_v24 = vor.u32 %v256_v16, %v255_v15 }
  0x1d   :  { %vm261_vm10 = vcmp.lt.s32.totalorder %v812_v34, 4  ;;  %v262_v25 = vsel %vm258_vm6, %v242_v59, %v245_v9  ;;  %v266_v21 = vsel %vm258_vm6, %v245_v9, %v248_v10  ;;  %v270_v28 = vsel %vm258_vm6, %v248_v10, %v251_v18 }
  0x1e   :  { %v78_v26 = vsel %vm76_vm8, %v77_v19, %v826_v8  ;;  %v263_v20 = vsel %vm261_vm10, %v251_v18, 2102212464  ;;  %v267_v27 = vsel %vm261_vm10, %v254_v23, 920167782  ;;  %v271_v32 = vsel %vm261_vm10, %v257_v24, 1326507024 }
  0x1f   :  { %v79_v29 = vadd.s32 %v78_v26, %v74_v17  ;;  %v264_v30 = vsel %vm260_vm9, %v248_v10, %v263_v20  ;;  %v268_v31 = vsel %vm260_vm9, %v251_v18, %v267_v27  ;;  %v272_v36 = vsel %vm260_vm9, %v254_v23, %v271_v32 }
  0x20   :  { %v265_v33 = vsel %vm259_vm7, %v262_v25, %v264_v30  ;;  %v269_v35 = vsel %vm259_vm7, %v266_v21, %v268_v31  ;;  %v273_v38 = vsel %vm259_vm7, %v270_v28, %v272_v36  ;;  %v75_v57 = vadd.s32 %v825_v7, %v822_v6 }
  0x21   :  { %v80_v37 = vadd.s32 536870912, %v79_v29  ;;  %v843_v39 = vmul.u32.u64.low %v810_v22, %v269_v35  ;;  %v844_v40 = vmul.u32.u64.high %v810_v22, %v269_v35, %v843_v39  ;;  %v281_v44 = vmul.u32 %v810_v22, %v265_v33 }
  0x22   :  { %v847_v41 = vmul.u32.u64.low %v810_v22, %v273_v38  ;;  %v848_v42 = vmul.u32.u64.high %v810_v22, %v273_v38, %v847_v41  ;;  %vm111_vm8 = vweird.f32 %v793_v0 }
  0x23   :  { %v81_v43 = vshrl.u32 %v80_v37, 30  ;;  %v284_v46 = vadd.s32 1, %v844_v40 }
  0x24   :  { %vm283_vm11 = vc.u32 %v848_v42, %v843_v39  ;;  %v282_v13 = vadd.s32 %v843_v39, %v848_v42 }
  0x25   :  { %v82_v45 = vshll.u32 %v81_v43, 30  ;;  %v285_v34 = vsel %vm283_vm11, %v284_v46, %v844_v40  ;;  %v105_v24 = vsub.s32 4, %v81_v43 }
  0x26   :  { %v286_v48 = vadd.s32 %v285_v34, %v281_v44 }
  0x27   :  { %v83_v47 = vsub.s32 %v79_v29, %v82_v45  ;;  %v106_v29 = vsel %vm21_vm14, %v105_v24, %v81_v43  ;;  %v691_v24 = vld [vmem:[%s1094_s3 + $0x8] sm:$0xff] }
  0x28   :  { %v287_v50 = vadd.s32 536870912, %v286_v48  ;;  %v108_v32 = vsel %vm20_vm15, 0, %v106_v29 }
  0x29   :  { %v85_v49 = vsub.s32 0, %v83_v47  ;;  %v112_v36 = vadd.s32 3, %v108_v32  ;;  %v216_v37 = vand.u32 3, %v108_v32 }
  0x2a   :  { %v288_v52 = vshrl.u32 %v287_v50, 30 }
  0x2b   :  { %v674_v51 = vmin.u32 %v85_v49, %v83_v47  ;;  %v113_v42 = vand.u32 3, %v112_v36  ;;  %vm221_vm2 = vcmp.eq.s32.totalorder %v216_v37, 2  ;;  %vm218_vm3 = vcmp.eq.s32.totalorder %v216_v37, 0 }
  0x2c   :  { %v289_v54 = vshll.u32 %v288_v52, 30  ;;  %v312_v31 = vsub.s32 4, %v288_v52  ;;  %vm217_vm4 = vcmp.lt.s32.totalorder %v216_v37, 2  ;;  %v699_v37 = vld [vmem:[%s1094_s3 + $0x48] sm:$0xff] }
  0x2d   :  { %v87_v53 = vclz %v674_v51  ;;  %vm115_vm5 = vcmp.eq.s32.totalorder %v113_v42, 0  ;;  %vm118_vm6 = vcmp.eq.s32.totalorder %v113_v42, 2  ;;  %vm114_vm7 = vcmp.lt.s32.totalorder %v113_v42, 2 }
  0x2e   :  { %v290_v56 = vsub.s32 %v286_v48, %v289_v54  ;;  %v313_v35 = vsel %vm228_vm0, %v312_v31, %v288_v52  ;;  %v698_v31 = vld [vmem:[%s1094_s3 + $0x40] sm:$0xff] }
  0x2f   :  { %v675_v55 = vadd.s32 4294967294, %v87_v53  ;;  %v315_v40 = vsel %vm227_vm1, 0, %v313_v35 }
  0x30   :  { %v292_v58 = vsub.s32 0, %v290_v56  ;;  %v319_v45 = vadd.s32 3, %v315_v40  ;;  %v423_v48 = vand.u32 3, %v315_v40 }
  0x31   :  { %vm676_vm12 = vcmp.lt.s32.totalorder %v675_v55, 0 }
  0x32   :  { %v90_v22 = vsel %vm676_vm12, 0, %v675_v55  ;;  %v682_v62 = vmin.u32 %v292_v58, %v290_v56  ;;  %v320_v34 = vand.u32 3, %v319_v45  ;;  %vm428_vm10 = vcmp.eq.s32.totalorder %v423_v48, 2  ;;  %v702_v45 = vld [vmem:[%s1094_s3 + $0x60] sm:$0xff] }
  0x33   :  { %v91_v59 = vsub.s32 32, %v90_v22  ;;  %v92_v60 = vshll.u32 %v83_v47, %v90_v22  ;;  %v95_v61 = vsub.s32 4294967266, %v90_v22  ;;  %vm425_vm12 = vcmp.eq.s32.totalorder %v423_v48, 0  ;;  %v435_v22 = vld [vmem:[%s1093_s2] sm:$0xff] }
  0x34   :  { %v294_v5 = vclz %v682_v62  ;;  %vm325_vm9 = vcmp.eq.s32.totalorder %v320_v34, 2  ;;  %vm322_vm11 = vcmp.eq.s32.totalorder %v320_v34, 0 }
  0x35   :  { %v93_v63 = vshrl.u32 %v75_v57, %v91_v59  ;;  %v96_v3 = vadd.s32 127, %v95_v61  ;;  %v690_v61 = vld [vmem:[%s1093_s2 + $0x10] sm:$0xff] }
  0x36   :  { %v683_v10 = vadd.s32 4294967294, %v294_v5 }
  0x37   :  { %v94_v8 = vor.u32 %v93_v63, %v92_v60  ;;  %v97_v9 = vshll.u32 %v96_v3, 23  ;;  %v689_v60 = vld [vmem:[%s1093_s2 + $0x8] sm:$0xff] }
  0x38   :  { %vm684_vm13 = vcmp.lt.s32.totalorder %v683_v10, 0 }
  0x39   :  { %v98_v11 = vor.u32 4788187, %v97_v9  ;;  %v101_v12 = vcvt.s32.f32 %v94_v8  ;;  %v297_v6 = vsel %vm684_vm13, 0, %v683_v10  ;;  %vm321_vm13 = vcmp.lt.s32.totalorder %v320_v34, 2  ;;  %v693_v8 = vld [vmem:[%s1094_s3 + $0x18] sm:$0xff] }
  0x3a   :  { %v298_v7 = vsub.s32 32, %v297_v6  ;;  %v299_v15 = vshll.u32 %v290_v56, %v297_v6  ;;  %v302_v16 = vsub.s32 4294967266, %v297_v6 }
  0x3b   :  { %v99_v14 = vand.u32 2147483647, %v98_v11 }
  0x3c   :  { %v300_v18 = vshrl.u32 %v282_v13, %v298_v7  ;;  %v303_v19 = vadd.s32 127, %v302_v16  ;;  %v694_v13 = vld [vmem:[%s1094_s3 + $0x20] sm:$0xff]  ;;  %v439_v7 = vmul.f32 0.2820948, %v689_v60 }
  0x3d   :  { %v102_v17 = vmul.f32 %v101_v12, %v99_v14  ;;  %v436_v12 = vmul.f32 0.2820948, %v435_v22 }
  0x3e   :  { %v301_v25 = vor.u32 %v300_v18, %v299_v15  ;;  %v304_v21 = vshll.u32 %v303_v19, 23  ;;  %v442_v15 = vmul.f32 0.2820948, %v690_v61  ;;  %v444_v18 = vld [vmem:[%s1094_s3] sm:$0xff] }
  0x3f   :  { %v103_v23 = vxor.u32 2147483648, %v102_v17 }
  0x40   :  { %v305_v27 = vor.u32 4788187, %v304_v21  ;;  %v308_v28 = vcvt.s32.f32 %v301_v25 }
  0x41   :  { %v104_v26 = vsel %vm21_vm14, %v103_v23, %v102_v17  ;;  %vm424_vm14 = vcmp.lt.s32.totalorder %v423_v48, 2  ;;  %v703_v48 = vld [vmem:[%s1094_s3 + $0x68] sm:$0xff] }
  0x42   :  { %v107_v20 = vsel %vm20_vm15, %v793_v0, %v104_v26  ;;  %v306_v30 = vand.u32 2147483647, %v305_v27  ;;  %vm318_vm15 = vweird.f32 %v798_v1  ;;  %v695_v0 = vld [vmem:[%s1094_s3 + $0x28] sm:$0xff]  ;;  %v696_v26 = vld [vmem:[%s1094_s3 + $0x30] sm:$0xff] }
  0x43   :  { %751 = vcosq.f32 %v107_v20 }
  0x44   :  { %753 = vsinq.f32 %v107_v20  ;;  %v309_v33 = vmul.f32 %v308_v28, %v306_v30  ;;  %v697_v30 = vld [vmem:[%s1094_s3 + $0x38] sm:$0xff] }
  0x46   :  { %v310_v2 = vxor.u32 2147483648, %v309_v33 }
  0x48   :  { %v311_v38 = vsel %vm228_vm0, %v310_v2, %v309_v33  ;;  %vm663_vm0 = vcmask 261120  }
  0x49   :  { %v314_v39 = vsel %vm227_vm1, %v798_v1, %v311_v38  ;;  %v692_v1 = vld [vmem:[%s1094_s3 + $0x10] sm:$0xff] }
  0x4a   :  { %755 = vcosq.f32 %v314_v39 }
  0x4b   :  { %757 = vsinq.f32 %v314_v39 }
  0x4d   :  { %v752_v41 = vpop.eup %751 }
  0x4e   :  { %v754_v43 = vpop.eup %753  ;;  %v119_v44 = vxor.u32 2147483648, %v752_v41 }
  0x4f   :  { %v116_v46 = vxor.u32 2147483648, %v754_v43 }
  0x50   :  { %v223_v4 = vsel %vm221_vm2, %v119_v44, %v754_v43  ;;  %v120_v51 = vsel %vm118_vm6, %v119_v44, %v754_v43  ;;  %v700_v43 = vld [vmem:[%s1094_s3 + $0x50] sm:$0xff]  ;;  %v701_v44 = vld [vmem:[%s1094_s3 + $0x58] sm:$0xff] }
  0x51   :  { %v220_v47 = vsel %vm218_vm3, %v752_v41, %v116_v46  ;;  %v117_v50 = vsel %vm115_vm5, %v752_v41, %v116_v46 }
  0x52   :  { %v224_v49 = vsel %vm217_vm4, %v220_v47, %v223_v4  ;;  %v121_v55 = vsel %vm114_vm7, %v117_v50, %v120_v51 }
  0x53   :  { %v867_v53 = vsel %vm111_vm8, nan, %v224_v49  ;;  %v122_v63 = vsel %vm111_vm8, nan, %v121_v55 }
  0x54   :  { %v756_v52 = vpop.eup %755  ;;  %v455_v62 = vmul.f32 0.48860252, %v867_v53  ;;  %v483_v9 = vmul.f32 %v867_v53, %v867_v53  ;;  %v906_v23 = vmul.f32 0.37317634, %v867_v53 }
  0x55   :  { %v758_v54 = vpop.eup %757  ;;  %v326_v56 = vxor.u32 2147483648, %v756_v52 }
  0x56   :  { %v323_v57 = vxor.u32 2147483648, %v758_v54  ;;  %v458_v19 = vmul.f32 %v693_v8, %v455_v62  ;;  %v462_v25 = vmul.f32 %v694_v13, %v455_v62  ;;  %v466_v21 = vmul.f32 %v695_v0, %v455_v62  ;;  %v708_v62 = vld [vmem:[%s1094_s3 + $0x90] sm:$0xff]  ;;  %v705_v0 = vld [vmem:[%s1094_s3 + $0x78] sm:$0xff] }
  0x57   :  { %v327_v58 = vsel %vm325_vm9, %v326_v56, %v758_v54  ;;  %v430_v59 = vsel %vm428_vm10, %v326_v56, %v758_v54  ;;  %v917_v20 = vmul.f32 2.0, %v483_v9  ;;  %v919_v27 = vmul.f32 4.0, %v483_v9 }
  0x58   :  { %v324_v3 = vsel %vm322_vm11, %v756_v52, %v323_v57  ;;  %v427_v5 = vsel %vm425_vm12, %v756_v52, %v323_v57  ;;  %v704_v52 = vld [vmem:[%s1094_s3 + $0x70] sm:$0xff] }
  0x59   :  { %v328_v10 = vsel %vm321_vm13, %v324_v3, %v327_v58  ;;  %v431_v11 = vsel %vm424_vm14, %v427_v5, %v430_v59  ;;  %v710_v3 = vld [vmem:[%s1094_s3 + $0xa0] sm:$0xff] }
  0x5a   :  { %v329_v14 = vsel %vm318_vm15, nan, %v328_v10  ;;  %v432_v6 = vsel %vm318_vm15, nan, %v431_v11 }
  0x5b   :  { %v898_v16 = vmul.f32 %v432_v6, %v122_v63  ;;  %v900_v17 = vmul.f32 %v329_v14, %v122_v63  ;;  %v709_v63 = vld [vmem:[%s1094_s3 + $0x98] sm:$0xff]  ;;  %v706_v14 = vld [vmem:[%s1094_s3 + $0x80] sm:$0xff]  ;;  %v707_v6 = vld [vmem:[%s1094_s3 + $0x88] sm:$0xff] }
  0x5d   :  { %v443_v28 = vmul.f32 -0.48860252, %v900_v17  ;;  %v468_v29 = vmul.f32 -0.48860252, %v898_v16  ;;  %v931_v32 = vmul.f32 %v898_v16, %v898_v16  ;;  %v935_v33 = vmul.f32 %v900_v17, %v900_v17 }
  0x5e   :  { %v939_v2 = vmul.f32 %v900_v17, %v898_v16  ;;  %v485_v35 = vmul.f32 %v900_v17, %v867_v53  ;;  %v486_v36 = vmul.f32 %v898_v16, %v867_v53  ;;  %v949_v38 = vmul.f32 -0.5900436, %v900_v17 }
  0x5f   :  { %v445_v39 = vmul.f32 %v444_v18, %v443_v28  ;;  %v449_v40 = vmul.f32 %v691_v24, %v443_v28  ;;  %v453_v41 = vmul.f32 %v692_v1, %v443_v28  ;;  %v471_v42 = vmul.f32 %v696_v26, %v468_v29  ;;  %v711_v1 = vld [vmem:[%s1094_s3 + $0xa8] sm:$0xff] }
  0x60   :  { %v475_v46 = vmul.f32 %v697_v30, %v468_v29  ;;  %v479_v4 = vmul.f32 %v698_v31, %v468_v29  ;;  %v487_v47 = vmul.f32 1.0925485, %v939_v2  ;;  %v500_v34 = vmul.f32 -1.0925485, %v485_v35  ;;  %v712_v29 = vld [vmem:[%s1094_s3 + $0xb0] sm:$0xff]  ;;  %v713_v30 = vld [vmem:[%s1094_s3 + $0xb8] sm:$0xff] }
  0x61   :  { %v446_v49 = vadd.f32 %v445_v39, %v436_v12  ;;  %v450_v50 = vadd.f32 %v449_v40, %v439_v7  ;;  %v454_v51 = vadd.f32 %v453_v41, %v442_v15  ;;  %v514_v54 = vsub.f32 %v917_v20, %v931_v32 }
  0x62   :  { %v490_v55 = vmul.f32 %v699_v37, %v487_v47  ;;  %v494_v56 = vmul.f32 %v700_v43, %v487_v47  ;;  %v498_v57 = vmul.f32 %v701_v44, %v487_v47  ;;  %v503_v22 = vmul.f32 %v702_v45, %v500_v34  ;;  %v714_v43 = vld [vmem:[%s1094_s3 + $0xc0] sm:$0xff]  ;;  %v715_v44 = vld [vmem:[%s1094_s3 + $0xc8] sm:$0xff]  ;;  %v716_v45 = vld [vmem:[%s1094_s3 + $0xd0] sm:$0xff] }
  0x63   :  { %v459_v58 = vadd.f32 %v458_v19, %v446_v49  ;;  %v463_v59 = vadd.f32 %v462_v25, %v450_v50  ;;  %v467_v60 = vadd.f32 %v466_v21, %v454_v51  ;;  %v507_v61 = vmul.f32 %v703_v48, %v500_v34  ;;  %v717_v51 = vld [vmem:[%s1094_s3 + $0xd8] sm:$0xff] }
  0x64   :  { %v511_v5 = vmul.f32 %v704_v52, %v500_v34  ;;  %v515_v8 = vsub.f32 %v514_v54, %v935_v33  ;;  %v529_v9 = vmul.f32 -1.0925485, %v486_v36  ;;  %v981_v10 = vsub.f32 %v931_v32, %v935_v33  ;;  %v718_v52 = vld [vmem:[%s1094_s3 + $0xe0] sm:$0xff]  ;;  %v719_v54 = vld [vmem:[%s1094_s3 + $0xe8] sm:$0xff] }
  0x65   :  { %v472_v11 = vadd.f32 %v471_v42, %v459_v58  ;;  %v476_v12 = vadd.f32 %v475_v46, %v463_v59  ;;  %v480_v13 = vadd.f32 %v479_v4, %v467_v60  ;;  %v557_v7 = vmul.f32 3.0, %v931_v32 }
  0x66   :  { %v516_v15 = vmul.f32 0.31539157, %v515_v8  ;;  %v532_v18 = vmul.f32 %v708_v62, %v529_v9  ;;  %v536_v19 = vmul.f32 %v709_v63, %v529_v9  ;;  %v540_v24 = vmul.f32 %v710_v3, %v529_v9 }
  0x67   :  { %v491_v25 = vadd.f32 %v490_v55, %v472_v11  ;;  %v495_v21 = vadd.f32 %v494_v56, %v476_v12  ;;  %v499_v26 = vadd.f32 %v498_v57, %v480_v13  ;;  %v543_v28 = vmul.f32 0.54627424, %v981_v10  ;;  %v720_v11 = vld [vmem:[%s1094_s3 + $0xf0] sm:$0xff] }
  0x68   :  { %v519_v31 = vmul.f32 %v705_v0, %v516_v15  ;;  %v523_v35 = vmul.f32 %v706_v14, %v516_v15  ;;  %v527_v36 = vmul.f32 %v707_v6, %v516_v15  ;;  %v558_v37 = vsub.f32 %v557_v7, %v935_v33 }
  0x69   :  { %v504_v39 = vadd.f32 %v503_v22, %v491_v25  ;;  %v508_v40 = vadd.f32 %v507_v61, %v495_v21  ;;  %v512_v41 = vadd.f32 %v511_v5, %v499_v26  ;;  %v546_v42 = vmul.f32 %v711_v1, %v543_v28  ;;  %v723_v26 = vld [vmem:[%s1094_s3 + $0x108] sm:$0xff] }
  0x6a   :  { %v550_v46 = vmul.f32 %v712_v29, %v543_v28  ;;  %v554_v4 = vmul.f32 %v713_v30, %v543_v28  ;;  %v559_v47 = vmul.f32 %v558_v37, %v949_v38  ;;  %v572_v34 = vmul.f32 2.8906114, %v939_v2  ;;  %v724_v28 = vld [vmem:[%s1094_s3 + $0x110] sm:$0xff] }
  0x6b   :  { %v520_v48 = vadd.f32 %v519_v31, %v504_v39  ;;  %v524_v49 = vadd.f32 %v523_v35, %v508_v40  ;;  %v528_v50 = vadd.f32 %v527_v36, %v512_v41  ;;  %v586_v55 = vmul.f32 -0.4570458, %v900_v17  ;;  %v725_v35 = vld [vmem:[%s1094_s3 + $0x118] sm:$0xff]  ;;  %v728_v36 = vld [vmem:[%s1094_s3 + $0x130] sm:$0xff] }
  0x6c   :  { %v562_v38 = vmul.f32 %v714_v43, %v559_v47  ;;  %v566_v56 = vmul.f32 %v715_v44, %v559_v47  ;;  %v570_v2 = vmul.f32 %v716_v45, %v559_v47  ;;  %v573_v57 = vmul.f32 %v572_v34, %v867_v53 }
  0x6d   :  { %v533_v22 = vadd.f32 %v532_v18, %v520_v48  ;;  %v537_v58 = vadd.f32 %v536_v19, %v524_v49  ;;  %v541_v59 = vadd.f32 %v540_v24, %v528_v50  ;;  %v588_v60 = vsub.f32 %v919_v27, %v931_v32 }
  0x6e   :  { %v576_v61 = vmul.f32 %v717_v51, %v573_v57  ;;  %v580_v62 = vmul.f32 %v718_v52, %v573_v57  ;;  %v584_v63 = vmul.f32 %v719_v54, %v573_v57  ;;  %v604_v3 = vsub.f32 %v917_v20, %v557_v7  ;;  %v721_v20 = vld [vmem:[%s1094_s3 + $0xf8] sm:$0xff]  ;;  %v722_v7 = vld [vmem:[%s1094_s3 + $0x100] sm:$0xff] }
  0x6f   :  { %v547_v5 = vadd.f32 %v546_v42, %v533_v22  ;;  %v551_v8 = vadd.f32 %v550_v46, %v537_v58  ;;  %v555_v9 = vadd.f32 %v554_v4, %v541_v59  ;;  %v589_v17 = vsub.f32 %v588_v60, %v935_v33  ;;  %v729_v42 = vld [vmem:[%s1094_s3 + $0x138] sm:$0xff] }
  0x70   :  { %v605_v12 = vmul.f32 3.0, %v935_v33  ;;  %v620_v13 = vmul.f32 -0.4570458, %v898_v16  ;;  %v634_v27 = vmul.f32 1.4453057, %v867_v53  ;;  %v726_v33 = vld [vmem:[%s1094_s3 + $0x120] sm:$0xff] }
  0x71   :  { %v563_v0 = vadd.f32 %v562_v38, %v547_v5  ;;  %v567_v14 = vadd.f32 %v566_v56, %v551_v8  ;;  %v571_v6 = vadd.f32 %v570_v2, %v555_v9  ;;  %v590_v15 = vmul.f32 %v589_v17, %v586_v55  ;;  %v727_v53 = vld [vmem:[%s1094_s3 + $0x128] sm:$0xff]  ;;  %v733_v54 = vld [vmem:[%s1094_s3 + $0x158] sm:$0xff]  ;;  %v734_v55 = vld [vmem:[%s1094_s3 + $0x160] sm:$0xff] }
  0x72   :  { %v606_v18 = vsub.f32 %v604_v3, %v605_v12  ;;  %v621_v19 = vmul.f32 %v620_v13, %v589_v17  ;;  %v635_v37 = vmul.f32 %v634_v27, %v981_v10  ;;  %v648_v43 = vmul.f32 -0.5900436, %v898_v16  ;;  %v731_v10 = vld [vmem:[%s1094_s3 + $0x148] sm:$0xff]  ;;  %v732_v16 = vld [vmem:[%s1094_s3 + $0x150] sm:$0xff] }
  0x73   :  { %v577_v24 = vadd.f32 %v576_v61, %v563_v0  ;;  %v581_v1 = vadd.f32 %v580_v62, %v567_v14  ;;  %v585_v25 = vadd.f32 %v584_v63, %v571_v6  ;;  %v593_v21 = vmul.f32 %v720_v11, %v590_v15 }
  0x74   :  { %v597_v29 = vmul.f32 %v721_v20, %v590_v15  ;;  %v601_v30 = vmul.f32 %v722_v7, %v590_v15  ;;  %v607_v31 = vmul.f32 %v606_v18, %v906_v23  ;;  %v624_v40 = vmul.f32 %v726_v33, %v621_v19  ;;  %v730_v23 = vld [vmem:[%s1094_s3 + $0x140] sm:$0xff] }
  0x75   :  { %v594_v39 = vadd.f32 %v593_v21, %v577_v24  ;;  %v628_v41 = vmul.f32 %v727_v53, %v621_v19  ;;  %v632_v34 = vmul.f32 %v728_v36, %v621_v19  ;;  %v649_v48 = vsub.f32 %v931_v32, %v605_v12 }
  0x76   :  { %v598_v44 = vadd.f32 %v597_v29, %v581_v1  ;;  %v602_v45 = vadd.f32 %v601_v30, %v585_v25  ;;  %v610_v46 = vmul.f32 %v723_v26, %v607_v31  ;;  %v614_v4 = vmul.f32 %v724_v28, %v607_v31 }
  0x77   :  { %v618_v47 = vmul.f32 %v725_v35, %v607_v31  ;;  %v638_v51 = vmul.f32 %v729_v42, %v635_v37  ;;  %v642_v52 = vmul.f32 %v730_v23, %v635_v37  ;;  %v646_v56 = vmul.f32 %v731_v10, %v635_v37 }
  0x78   :  { %v611_v49 = vadd.f32 %v610_v46, %v594_v39  ;;  %v615_v50 = vadd.f32 %v614_v4, %v598_v44  ;;  %v650_v2 = vmul.f32 %v649_v48, %v648_v43 }
  0x79   :  { %v619_v38 = vadd.f32 %v618_v47, %v602_v45 }
  0x7a   :  { %v625_v32 = vadd.f32 %v624_v40, %v611_v49  ;;  %v629_v57 = vadd.f32 %v628_v41, %v615_v50  ;;  %v653_v58 = vmul.f32 %v732_v16, %v650_v2  ;;  %v657_v59 = vmul.f32 %v733_v54, %v650_v2 }
  0x7b   :  { %v633_v22 = vadd.f32 %v632_v34, %v619_v38  ;;  %v661_v60 = vmul.f32 %v734_v55, %v650_v2 }
  0x7c   :  { %v639_v61 = vadd.f32 %v638_v51, %v625_v32  ;;  %v643_v62 = vadd.f32 %v642_v52, %v629_v57 }
  0x7d   :  { %v647_v63 = vadd.f32 %v646_v56, %v633_v22 }
  0x7e   :  { %v654_v3 = vadd.f32 %v653_v58, %v639_v61  ;;  %v658_v5 = vadd.f32 %v657_v59, %v643_v62 }
  0x7f   :  { %v662_v8 = vadd.f32 %v661_v60, %v647_v63 }
  0x80   :  { %664 = vst.msk [vmem:[%s1095_s4] sm:$0xff] %vm663_vm0, %v654_v3  ;;  %735 = vst.msk [vmem:[%s1095_s4 + $0x8] sm:$0xff] %vm663_vm0, %v658_v5 }
  0x81   :  { %736 = vst.msk [vmem:[%s1095_s4 + $0x10] sm:$0xff] %vm663_vm0, %v662_v8 }

</bundles_post_ra>
